<compile_context>
chip_gen: v6e
topology: v6e:2x2x1
jax: 0.10.0
libtpu: 0.0.40
codegen_flags: <defaults>
</compile_context>

<pallas_src>
import jax
import jax.numpy as jnp
from jax.experimental import pallas as pl
from jax.experimental.pallas import tpu as pltpu


def _round_up(n, m):
    return ((n + m - 1) // m) * m


def fpn_kernel(x_ref, w1_ref, b1_ref, w2_ref, b2_ref, o_ref):
    # fc1: bf16 MXU inputs, f32 accumulation.
    h = jnp.dot(x_ref[...], w1_ref[...], preferred_element_type=jnp.float32)
    # bias + (dropout == identity in eval mode) + ReLU, kept in f32 on the VPU.
    # TODO(synk): training-mode dropout would use pltpu.prng_seed / prng_random_bits.
    h = jnp.maximum(h + b1_ref[...], 0.0)
    # fc2: cast the activation to bf16 only at the MXU input.
    out = jnp.dot(h.astype(jnp.bfloat16), w2_ref[...],
                  preferred_element_type=jnp.float32)
    o_ref[...] = (out + b2_ref[...]).astype(o_ref.dtype)


def _build_call(tb, Fp, Hp, n_steps, Bp, *, single_buffer_weights):
    const_kw = {}
    if single_buffer_weights:
        # Weights / biases never change across the grid -> one VMEM copy suffices.
        const_kw = dict(pipeline_mode=pl.Buffered(1))

    flops = 2 * Bp * (Fp * Hp + Hp * Hp)
    bytes_accessed = (Bp * Fp * 2                 # x (bf16)
                      + (Fp * Hp + Hp * Hp) * 2   # W1, W2 (bf16)
                      + 2 * Hp * 4                # biases (f32)
                      + Bp * Hp * 4)              # output (f32)

    return pl.pallas_call(
        fpn_kernel,
        out_shape=jax.ShapeDtypeStruct((Bp, Hp), jnp.float32),
        grid_spec=pl.GridSpec(
            grid=(n_steps,),
            in_specs=[
                pl.BlockSpec((tb, Fp), lambda i: (i, 0)),             # x tile
                pl.BlockSpec((Fp, Hp), lambda i: (0, 0), **const_kw),  # W1 (resident)
                pl.BlockSpec((1, Hp), lambda i: (0, 0), **const_kw),   # b1
                pl.BlockSpec((Hp, Hp), lambda i: (0, 0), **const_kw),  # W2 (resident)
                pl.BlockSpec((1, Hp), lambda i: (0, 0), **const_kw),   # b2
            ],
            out_specs=pl.BlockSpec((tb, Hp), lambda i: (i, 0)),
        ),
        compiler_params=pltpu.CompilerParams(
            dimension_semantics=("parallel",),      # megacore-shard batch tiles (v7x)
            vmem_limit_bytes=48 * 1024 * 1024,      # below v7x's 64 MiB physical VMEM
        ),
        cost_estimate=pl.CostEstimate(
            flops=flops, transcendentals=0, bytes_accessed=bytes_accessed),
    )


def fpn_forward(x, w1, b1, w2, b2, *, tb=256):
    """x: (B, fp_dim); w1: (fp_dim, H); b1: (1, H); w2: (H, H); b2: (1, H).

    Weights follow PyTorch nn.Linear semantics but are stored transposed
    ((in_features, out_features)) so the kernel computes x @ W + b.
    """
    B, F = x.shape
    H = w1.shape[1]

    # Lane-dense padding of the feature dims (no-op for the math; sliced below).
    Fp = _round_up(F, 128)
    Hp = _round_up(H, 128)

    # Batch tile: whole (sublane-padded) batch when small, else `tb` rows
    # (multiple of 8 sublanes; 256 fills the v6e/v7x MXU, 2x v5e's).
    tb = min(tb, max(8, _round_up(B, 8)))
    Bp = pl.cdiv(B, tb) * tb
    n_steps = Bp // tb

    # bf16 MXU inputs (f32 accumulation happens inside the kernel); f32 biases.
    xb = jnp.pad(x, ((0, Bp - B), (0, Fp - F))).astype(jnp.bfloat16)
    w1b = jnp.pad(w1, ((0, Fp - F), (0, Hp - H))).astype(jnp.bfloat16)
    w2b = jnp.pad(w2, ((0, Hp - H), (0, Hp - H))).astype(jnp.bfloat16)
    b1f = jnp.pad(b1.reshape(1, H), ((0, 0), (0, Hp - H))).astype(jnp.float32)
    b2f = jnp.pad(b2.reshape(1, H), ((0, 0), (0, Hp - H))).astype(jnp.float32)

    try:
        call = _build_call(tb, Fp, Hp, n_steps, Bp, single_buffer_weights=True)
        out = call(xb, w1b, b1f, w2b, b2f)
    except Exception:  # JAX build without pipeline_mode support on pallas_call specs
        call = _build_call(tb, Fp, Hp, n_steps, Bp, single_buffer_weights=False)
        out = call(xb, w1b, b1f, w2b, b2f)

    return out[:B, :H]


def fpn_reference(x, w1, b1, w2, b2):
    # Mirrors the kernel's precision: bf16 MXU inputs, f32 accumulation.
    h = jnp.dot(x.astype(jnp.bfloat16), w1.astype(jnp.bfloat16),
                preferred_element_type=jnp.float32) + b1.reshape(1, -1)
    h = jnp.maximum(h, 0.0)
    return jnp.dot(h.astype(jnp.bfloat16), w2.astype(jnp.bfloat16),
                   preferred_element_type=jnp.float32) + b2.reshape(1, -1)


if __name__ == "__main__":
    # Small shapes consistent with FPN(fp_dim, hidden_dim, dropout) in eval mode.
    batch, fp_dim, hidden_dim = 16, 256, 128

    key = jax.random.PRNGKey(0)
    kx, kw1, kb1, kw2, kb2 = jax.random.split(key, 5)

    # Deterministic params (stored transposed vs PyTorch: (in_features, out_features)).
    x = jax.random.normal(kx, (batch, fp_dim), dtype=jnp.float32)
    w1 = jax.random.normal(kw1, (fp_dim, hidden_dim), dtype=jnp.float32) * 0.02
    b1 = jax.random.normal(kb1, (1, hidden_dim), dtype=jnp.float32) * 0.02
    w2 = jax.random.normal(kw2, (hidden_dim, hidden_dim), dtype=jnp.float32) * 0.02
    b2 = jax.random.normal(kb2, (1, hidden_dim), dtype=jnp.float32) * 0.02

    out = jax.block_until_ready(fpn_forward(x, w1, b1, w2, b2))
    ref = fpn_reference(x, w1, b1, w2, b2)
    assert out.shape == (batch, hidden_dim)
    assert jnp.allclose(out, ref, atol=1e-2, rtol=1e-2), "mismatch vs reference"

    # Zero-pad path: batch not a multiple of 8.
    x2 = jax.random.normal(kx, (20, fp_dim), dtype=jnp.float32)
    out2 = jax.block_until_ready(fpn_forward(x2, w1, b1, w2, b2))
    ref2 = fpn_reference(x2, w1, b1, w2, b2)
    assert out2.shape == (20, hidden_dim)
    assert jnp.allclose(out2, ref2, atol=1e-2, rtol=1e-2), "mismatch (padded batch)"

    # Non-lane-aligned feature dims (e.g. MACCS-sized fingerprints): exercises
    # the feature-padding path.
    f3, h3, b3n = 167, 96, 10
    k3 = jax.random.split(key, 6)
    x3 = jax.random.normal(k3[0], (b3n, f3), dtype=jnp.float32)
    w1_3 = jax.random.normal(k3[1], (f3, h3), dtype=jnp.float32) * 0.02
    b1_3 = jax.random.normal(k3[2], (1, h3), dtype=jnp.float32) * 0.02
    w2_3 = jax.random.normal(k3[3], (h3, h3), dtype=jnp.float32) * 0.02
    b2_3 = jax.random.normal(k3[4], (1, h3), dtype=jnp.float32) * 0.02
    out3 = jax.block_until_ready(fpn_forward(x3, w1_3, b1_3, w2_3, b2_3))
    ref3 = fpn_reference(x3, w1_3, b1_3, w2_3, b2_3)
    assert out3.shape == (b3n, h3)
    assert jnp.allclose(out3, ref3, atol=1e-2, rtol=1e-2), "mismatch (padded features)"

    print("KERNEL_OK")
</pallas_src>

<mosaic_0001>
module attributes {stable_mosaic.version = 11 : i64} {
  func.func @fpn_kernel(%arg0: i32, %arg1: memref<16x256xbf16, #tpu.memory_space<vmem>>, %arg2: memref<256x128xbf16, #tpu.memory_space<vmem>>, %arg3: memref<1x128xf32, #tpu.memory_space<vmem>>, %arg4: memref<128x128xbf16, #tpu.memory_space<vmem>>, %arg5: memref<1x128xf32, #tpu.memory_space<vmem>>, %arg6: memref<16x128xf32, #tpu.memory_space<vmem>>) attributes {dimension_semantics = [#tpu.dimension_semantics<parallel>], iteration_bounds = array<i64: 1>, scalar_prefetch = 0 : i64, scratch_operands = 0 : i64, tpu.core_type = #tpu.core_type<tc>, window_params = [{transform_indices = @transform_0, window_bounds = array<i64: 16, 256>}, {pipeline_mode = #tpu.pipeline_mode<synchronous>, transform_indices = @transform_1, window_bounds = array<i64: 256, 128>}, {pipeline_mode = #tpu.pipeline_mode<synchronous>, transform_indices = @transform_2, window_bounds = array<i64: 1, 128>}, {pipeline_mode = #tpu.pipeline_mode<synchronous>, transform_indices = @transform_3, window_bounds = array<i64: 128, 128>}, {pipeline_mode = #tpu.pipeline_mode<synchronous>, transform_indices = @transform_4, window_bounds = array<i64: 1, 128>}, {transform_indices = @transform_5, window_bounds = array<i64: 16, 128>}]} {
    %c0 = arith.constant 0 : index
    %c0_0 = arith.constant 0 : index
    %0 = vector.load %arg1[%c0, %c0_0] : memref<16x256xbf16, #tpu.memory_space<vmem>>, vector<16x256xbf16>
    %c0_1 = arith.constant 0 : index
    %c0_2 = arith.constant 0 : index
    %1 = vector.load %arg2[%c0_1, %c0_2] : memref<256x128xbf16, #tpu.memory_space<vmem>>, vector<256x128xbf16>
    %cst = arith.constant dense<0.000000e+00> : vector<16x128xf32>
    %2 = tpu.matmul %0, %1, %cst {dimension_numbers = #tpu.dot_dimension_numbers<[1], [0], [0], [1], [0, 0, 1, 1], [], []>} : vector<16x256xbf16>, vector<256x128xbf16>, vector<16x128xf32> -> vector<16x128xf32>
    %c0_3 = arith.constant 0 : index
    %c0_4 = arith.constant 0 : index
    %3 = vector.load %arg3[%c0_3, %c0_4] : memref<1x128xf32, #tpu.memory_space<vmem>>, vector<1x128xf32>
    %4 = vector.broadcast %3 : vector<1x128xf32> to vector<16x128xf32>
    %5 = arith.addf %2, %4 : vector<16x128xf32>
    %cst_5 = arith.constant 0.000000e+00 : f32
    %6 = vector.broadcast %cst_5 : f32 to vector<16x128xf32>
    %7 = arith.maximumf %5, %6 : vector<16x128xf32>
    %8 = arith.truncf %7 : vector<16x128xf32> to vector<16x128xbf16>
    %c0_6 = arith.constant 0 : index
    %c0_7 = arith.constant 0 : index
    %9 = vector.load %arg4[%c0_6, %c0_7] : memref<128x128xbf16, #tpu.memory_space<vmem>>, vector<128x128xbf16>
    %cst_8 = arith.constant dense<0.000000e+00> : vector<16x128xf32>
    %10 = tpu.matmul %8, %9, %cst_8 {dimension_numbers = #tpu.dot_dimension_numbers<[1], [0], [0], [1], [0, 0, 1, 1], [], []>} : vector<16x128xbf16>, vector<128x128xbf16>, vector<16x128xf32> -> vector<16x128xf32>
    %c0_9 = arith.constant 0 : index
    %c0_10 = arith.constant 0 : index
    %11 = vector.load %arg5[%c0_9, %c0_10] : memref<1x128xf32, #tpu.memory_space<vmem>>, vector<1x128xf32>
    %12 = vector.broadcast %11 : vector<1x128xf32> to vector<16x128xf32>
    %13 = arith.addf %10, %12 : vector<16x128xf32>
    %c0_11 = arith.constant 0 : index
    %c0_12 = arith.constant 0 : index
    %14 = vector.load %arg6[%c0_11, %c0_12] : memref<16x128xf32, #tpu.memory_space<vmem>>, vector<16x128xf32>
    tpu.vector_store %arg6[%c0_11, %c0_12], %13 {strides = array<i32>} : memref<16x128xf32, #tpu.memory_space<vmem>>, vector<16x128xf32>,
    return
  }
  func.func @transform_0(%arg0: i32) -> (i32, i32) {
    %c0_i32 = arith.constant 0 : i32
    %c0_i32_0 = arith.constant 0 : i32
    return %arg0, %c0_i32 : i32, i32
  }
  func.func @transform_1(%arg0: i32) -> (i32, i32) {
    %c0_i32 = arith.constant 0 : i32
    %c0_i32_0 = arith.constant 0 : i32
    %c0_i32_1 = arith.constant 0 : i32
    return %c0_i32, %c0_i32_0 : i32, i32
  }
  func.func @transform_2(%arg0: i32) -> (i32, i32) {
    %c0_i32 = arith.constant 0 : i32
    %c0_i32_0 = arith.constant 0 : i32
    %c0_i32_1 = arith.constant 0 : i32
    return %c0_i32, %c0_i32_0 : i32, i32
  }
  func.func @transform_3(%arg0: i32) -> (i32, i32) {
    %c0_i32 = arith.constant 0 : i32
    %c0_i32_0 = arith.constant 0 : i32
    %c0_i32_1 = arith.constant 0 : i32
    return %c0_i32, %c0_i32_0 : i32, i32
  }
  func.func @transform_4(%arg0: i32) -> (i32, i32) {
    %c0_i32 = arith.constant 0 : i32
    %c0_i32_0 = arith.constant 0 : i32
    %c0_i32_1 = arith.constant 0 : i32
    return %c0_i32, %c0_i32_0 : i32, i32
  }
  func.func @transform_5(%arg0: i32) -> (i32, i32) {
    %c0_i32 = arith.constant 0 : i32
    %c0_i32_0 = arith.constant 0 : i32
    return %arg0, %c0_i32 : i32, i32
  }
}

module attributes {stable_mosaic.version = 11 : i64} {
  func.func @fpn_kernel(%arg0: i32, %arg1: memref<16x256xbf16, #tpu.memory_space<vmem>>, %arg2: memref<256x128xbf16, #tpu.memory_space<vmem>>, %arg3: memref<1x128xf32, #tpu.memory_space<vmem>>, %arg4: memref<128x128xbf16, #tpu.memory_space<vmem>>, %arg5: memref<1x128xf32, #tpu.memory_space<vmem>>, %arg6: memref<16x128xf32, #tpu.memory_space<vmem>>) attributes {dimension_semantics = [#tpu.dimension_semantics<parallel>], iteration_bounds = array<i64: 1>, scalar_prefetch = 0 : i64, scratch_operands = 0 : i64, tpu.core_type = #tpu.core_type<tc>, window_params = [{transform_indices = @transform_0, window_bounds = array<i64: 16, 256>}, {pipeline_mode = #tpu.pipeline_mode<synchronous>, transform_indices = @transform_1, window_bounds = array<i64: 256, 128>}, {pipeline_mode = #tpu.pipeline_mode<synchronous>, transform_indices = @transform_2, window_bounds = array<i64: 1, 128>}, {pipeline_mode = #tpu.pipeline_mode<synchronous>, transform_indices = @transform_3, window_bounds = array<i64: 128, 128>}, {pipeline_mode = #tpu.pipeline_mode<synchronous>, transform_indices = @transform_4, window_bounds = array<i64: 1, 128>}, {transform_indices = @transform_5, window_bounds = array<i64: 16, 128>}]} {
    %c0 = arith.constant 0 : index
    %c0_0 = arith.constant 0 : index
    %0 = vector.load %arg1[%c0, %c0_0] : memref<16x256xbf16, #tpu.memory_space<vmem>>, vector<16x256xbf16>
    %c0_1 = arith.constant 0 : index
    %c0_2 = arith.constant 0 : index
    %1 = vector.load %arg2[%c0_1, %c0_2] : memref<256x128xbf16, #tpu.memory_space<vmem>>, vector<256x128xbf16>
    %cst = arith.constant dense<0.000000e+00> : vector<16x128xf32>
    %2 = tpu.matmul %0, %1, %cst {dimension_numbers = #tpu.dot_dimension_numbers<[1], [0], [0], [1], [0, 0, 1, 1], [], []>} : vector<16x256xbf16>, vector<256x128xbf16>, vector<16x128xf32> -> vector<16x128xf32>
    %c0_3 = arith.constant 0 : index
    %c0_4 = arith.constant 0 : index
    %3 = vector.load %arg3[%c0_3, %c0_4] : memref<1x128xf32, #tpu.memory_space<vmem>>, vector<1x128xf32>
    %4 = vector.broadcast %3 : vector<1x128xf32> to vector<16x128xf32>
    %5 = arith.addf %2, %4 : vector<16x128xf32>
    %cst_5 = arith.constant 0.000000e+00 : f32
    %6 = vector.broadcast %cst_5 : f32 to vector<16x128xf32>
    %7 = arith.maximumf %5, %6 : vector<16x128xf32>
    %8 = arith.truncf %7 : vector<16x128xf32> to vector<16x128xbf16>
    %c0_6 = arith.constant 0 : index
    %c0_7 = arith.constant 0 : index
    %9 = vector.load %arg4[%c0_6, %c0_7] : memref<128x128xbf16, #tpu.memory_space<vmem>>, vector<128x128xbf16>
    %cst_8 = arith.constant dense<0.000000e+00> : vector<16x128xf32>
    %10 = tpu.matmul %8, %9, %cst_8 {dimension_numbers = #tpu.dot_dimension_numbers<[1], [0], [0], [1], [0, 0, 1, 1], [], []>} : vector<16x128xbf16>, vector<128x128xbf16>, vector<16x128xf32> -> vector<16x128xf32>
    %c0_9 = arith.constant 0 : index
    %c0_10 = arith.constant 0 : index
    %11 = vector.load %arg5[%c0_9, %c0_10] : memref<1x128xf32, #tpu.memory_space<vmem>>, vector<1x128xf32>
    %12 = vector.broadcast %11 : vector<1x128xf32> to vector<16x128xf32>
    %13 = arith.addf %10, %12 : vector<16x128xf32>
    %c0_11 = arith.constant 0 : index
    %c0_12 = arith.constant 0 : index
    %14 = vector.load %arg6[%c0_11, %c0_12] : memref<16x128xf32, #tpu.memory_space<vmem>>, vector<16x128xf32>
    tpu.vector_store %arg6[%c0_11, %c0_12], %13 {strides = array<i32>} : memref<16x128xf32, #tpu.memory_space<vmem>>, vector<16x128xf32>,
    return
  }
  func.func @transform_0(%arg0: i32) -> (i32, i32) {
    %c0_i32 = arith.constant 0 : i32
    %c0_i32_0 = arith.constant 0 : i32
    return %arg0, %c0_i32 : i32, i32
  }
  func.func @transform_1(%arg0: i32) -> (i32, i32) {
    %c0_i32 = arith.constant 0 : i32
    %c0_i32_0 = arith.constant 0 : i32
    %c0_i32_1 = arith.constant 0 : i32
    return %c0_i32, %c0_i32_0 : i32, i32
  }
  func.func @transform_2(%arg0: i32) -> (i32, i32) {
    %c0_i32 = arith.constant 0 : i32
    %c0_i32_0 = arith.constant 0 : i32
    %c0_i32_1 = arith.constant 0 : i32
    return %c0_i32, %c0_i32_0 : i32, i32
  }
  func.func @transform_3(%arg0: i32) -> (i32, i32) {
    %c0_i32 = arith.constant 0 : i32
    %c0_i32_0 = arith.constant 0 : i32
    %c0_i32_1 = arith.constant 0 : i32
    return %c0_i32, %c0_i32_0 : i32, i32
  }
  func.func @transform_4(%arg0: i32) -> (i32, i32) {
    %c0_i32 = arith.constant 0 : i32
    %c0_i32_0 = arith.constant 0 : i32
    %c0_i32_1 = arith.constant 0 : i32
    return %c0_i32, %c0_i32_0 : i32, i32
  }
  func.func @transform_5(%arg0: i32) -> (i32, i32) {
    %c0_i32 = arith.constant 0 : i32
    %c0_i32_0 = arith.constant 0 : i32
    return %arg0, %c0_i32 : i32, i32
  }
}

</mosaic_0001>

<bundles_post_ra>
// kernel: tpu_custom_call.1
= control target key start
LH: loop header
LB: loop body
LE: loop exit
PB: predicated region body
PF: predicated region fallthrough
CT: control target
= control target key end

     0   :  { %10 = vsyncpa [#allocation3], 0  ;;  %s652_s0 = inlined_call_operand.hbm [shape: bf16[16,256], index: 0, kind: input, shape index: {}]   ;;  %s653_s1 = inlined_call_operand.hbm [shape: bf16[256,128], index: 1, kind: input, shape index: {}]   ;;  %s654_s2 = inlined_call_operand.vmem [shape: f32[1,128], index: 2, kind: input, shape index: {}]   ;;  %s655_s3 = inlined_call_operand.hbm [shape: bf16[128,128], index: 3, kind: input, shape index: {}]   ;;  %s656_s4 = inlined_call_operand.vmem [shape: f32[1,128], index: 4, kind: input, shape index: {}]   ;;  %s657_s5 = inlined_call_operand.hbm [shape: f32[16,128], index: 5, kind: output, shape index: {}]  }
   0x1   :  { %11 = vsyncpa [#allocation6], 0 }
   0x2   :  { %12 = vsyncpa [#allocation4], 0  ;;  %s588_s18 = smov [#allocation5]  }
   0x3   :  { %s30_s19 = sshll.u32 %s588_s18, 4  ;;  %s31_s19 = int_to_ptr.vmem [resolvable:$true] %s30_s19 }
   0x4   :  { %s510_s20 = scalar_lea.vmem %s31_s19, 2048  ;;  %p515_p1 = scmp.lt.s32.totalorder %s31_s19, %s31_s19 }
   0x5   :  { %p511_p0 = scmp.ne.s32.totalorder %s31_s19, %s510_s20  ;;  %p516_p2 = scmp.lt.s32.totalorder %s510_s20, %s510_s20 }
   0x7   :  { %p517_p3 = por %p516_p2, %p515_p1 }
   0x9   :  { %p518_p4 = pnand %p517_p3, %p511_p0 }
   0xb   :  { %521 = shalt.err (!%p518_p4)
}
   0xc   :  { %s589_s21 = smov 64   ;;  %s590_s22 = smov 4  }
   0xd   :  { %36 = dma.hbm_to_vmem [thread:$0]  %s653_s1, 2048, %s31_s19, [#allocation6], %s589_s21, %s589_s21, %s590_s22  }
   0xe   :  { %s591_s25 = smov [#allocation2]  }
   0xf   :  { %s18_s26 = sshll.u32 %s591_s25, 4  ;;  %s19_s26 = int_to_ptr.vmem [resolvable:$true] %s18_s26 }
  0x10   :  { %s530_s27 = scalar_lea.vmem %s19_s26, 256  ;;  %p535_p6 = scmp.lt.s32.totalorder %s19_s26, %s19_s26 }
  0x11   :  { %p531_p5 = scmp.ne.s32.totalorder %s19_s26, %s530_s27  ;;  %p536_p7 = scmp.lt.s32.totalorder %s530_s27, %s530_s27 }
  0x13   :  { %p537_p8 = por %p536_p7, %p535_p6 }
  0x15   :  { %p538_p9 = pnand %p537_p8, %p531_p5 }
  0x17   :  { %541 = shalt.err (!%p538_p9)
}
  0x18   :  { %s592_s28 = smov 128   ;;  %s593_s29 = smov 8  }
  0x19   :  { %24 = dma.hbm_to_vmem [thread:$0]  %s652_s0, 256, %s19_s26, [#allocation3], %s592_s28, %s592_s28, %s593_s29  }
  0x1a   :  { %s594_s1 = smov [#allocation7]  }
  0x1b   :  { %s44_s7 = sshll.u32 %s594_s1, 4  ;;  %s45_s7 = int_to_ptr.vmem [resolvable:$true] %s44_s7 }
  0x1c   :  { %s550_s8 = scalar_lea.vmem %s45_s7, 1024  ;;  %p555_p11 = scmp.lt.s32.totalorder %s45_s7, %s45_s7 }
  0x1d   :  { %p551_p10 = scmp.ne.s32.totalorder %s45_s7, %s550_s8  ;;  %p556_p12 = scmp.lt.s32.totalorder %s550_s8, %s550_s8 }
  0x1f   :  { %p557_p13 = por %p556_p12, %p555_p11 }
  0x21   :  { %p558_p0 = pnand %p557_p13, %p551_p10 }
  0x23   :  { %561 = shalt.err (!%p558_p0)
}
  0x24   :  { %50 = dma.hbm_to_vmem [thread:$0]  %s655_s3, 1024, %s45_s7, [#allocation6], %s589_s21, %s589_s21, %s590_s22  }
  0x25   :  { %582 = dma.done.wait [#allocation3], 256  }
  0x26   :  { %583 = vsyncadd [#allocation3], 4294967040 }
  0x27   :  { %584 = dma.done.wait [#allocation6], 3072  }
  0x28   :  { %585 = vsyncadd [#allocation6], 4294964224  ;;  %v595_v0 = vmov 0.0   ;;  %v475_v1 = vld [vmem:[#allocation5 + $0x78] sm:$0xff]   ;;  %v477_v3 = vld [vmem:[#allocation5 + $0x70] sm:$0xff]   ;;  %vm596_vm0 = vmmov 0  }
  0x29   :  { %445 = vmatprep.subr.bf16.mxu1 %v595_v0  ;;  %v476_v2 = vld [vmem:[#allocation5 + $0x38] sm:$0xff]   ;;  %414 = vmatprep.subr.bf16.mxu0 %v475_v1  ;;  %v478_v4 = vld [vmem:[#allocation5 + $0x30] sm:$0xff]   ;;  %v479_v5 = vld [vmem:[#allocation5 + $0x68] sm:$0xff]   ;;  %s597_s13 = smov [#allocation8]  }
  0x2a   :  { %415 = vmatpush3.bf16.msra.mxu0 %v476_v2  ;;  %v480_v6 = vld [vmem:[#allocation5 + $0x28] sm:$0xff]   ;;  %v481_v7 = vld [vmem:[#allocation5 + $0x60] sm:$0xff]   ;;  %v483_v9 = vld [vmem:[#allocation5 + $0x58] sm:$0xff]   ;;  %461 = vmatprep.mubr.msk.bf16.mxu1 %vm596_vm0, %v595_v0  ;;  %s373_s14 = sshll.u32 %s597_s13, 4  ;;  %s374_s14 = int_to_ptr.vmem [resolvable:$true] %s373_s14 }
  0x2b   :  { %416 = vmatprep.subr.bf16.mxu0 %v477_v3  ;;  %v482_v8 = vld [vmem:[#allocation5 + $0x20] sm:$0xff]   ;;  %v484_v10 = vld [vmem:[#allocation5 + $0x18] sm:$0xff]   ;;  %v485_v11 = vld [vmem:[#allocation5 + $0x50] sm:$0xff]   ;;  %p567_p2 = scmp.lt.s32.totalorder %s374_s14, %s374_s14 }
  0x2c   :  { %v486_v12 = vld [vmem:[#allocation5 + $0x10] sm:$0xff]   ;;  %v494_v14 = vld [vmem:[#allocation7 + $0x38] sm:$0xff]   ;;  %v487_v15 = vld [vmem:[#allocation5 + $0x48] sm:$0xff]  }
  0x2d   :  { %v493_v13 = vld [vmem:[#allocation2 + $0x4] ss:$8 sps:$4 sm:$0xff]   ;;  %446 = vmatpush3.bf16.msra.mxu1 %v494_v14  ;;  %v488_v17 = vld [vmem:[#allocation5 + $0x8] sm:$0xff]   ;;  %v489_v18 = vld [vmem:[#allocation5 + $0x40] sm:$0xff]  }
  0x2e   :  { %417 = vmatpush3.bf16.msra.mxu0 %v478_v4  ;;  %242 = vmatprep.mubr.bf16.mxu0 %v493_v13  ;;  %v495_v16 = vld [vmem:[#allocation7 + $0x30] sm:$0xff]   ;;  %v496_v19 = vld [vmem:[#allocation7 + $0x28] sm:$0xff]   ;;  %v490_v20 = vld [vmem:[#allocation5] sm:$0xff]  }
  0x2f   :  { %418 = vmatprep.subr.bf16.mxu0 %v479_v5  ;;  %447 = vmatprep.subr.bf16.mxu1 %v595_v0  ;;  %v497_v21 = vld [vmem:[#allocation7 + $0x20] sm:$0xff]   ;;  %v491_v22 = vld [vmem:[#allocation2] ss:$8 sps:$4 sm:$0xff]   ;;  %v500_v25 = vld [vmem:[#allocation7 + $0x8] sm:$0xff]  }
  0x30   :  { %v498_v23 = vld [vmem:[#allocation7 + $0x18] sm:$0xff]   ;;  %v499_v24 = vld [vmem:[#allocation7 + $0x10] sm:$0xff]   ;;  %v501_v26 = vld [vmem:[#allocation7] sm:$0xff]  }
  0x31   :  { %448 = vmatpush3.bf16.msra.mxu1 %v495_v16  ;;  %v386_v30 = vld [vmem:[%s654_s2] ss:$0 sm:$0xff]  ;;  %s562_s2 = scalar_lea.vmem %s374_s14, 256 }
  0x32   :  { %419 = vmatpush3.bf16.msra.mxu0 %v480_v6  ;;  %449 = vmatprep.subr.bf16.mxu1 %v595_v0  ;;  %v405_v39 = vld [vmem:[%s656_s4] ss:$0 sm:$0xff]  ;;  %p563_p1 = scmp.ne.s32.totalorder %s374_s14, %s562_s2  ;;  %p568_p3 = scmp.lt.s32.totalorder %s562_s2, %s562_s2 }
  0x33   :  { %420 = vmatprep.subr.bf16.mxu0 %v481_v7 }
  0x34   :  { %p569_p4 = por %p568_p3, %p567_p2 }
  0x35   :  { %450 = vmatpush3.bf16.msra.mxu1 %v496_v19 }
  0x36   :  { %421 = vmatpush3.bf16.msra.mxu0 %v482_v8  ;;  %451 = vmatprep.subr.bf16.mxu1 %v595_v0  ;;  %p570_p5 = pnand %p569_p4, %p563_p1 }
  0x37   :  { %422 = vmatprep.subr.bf16.mxu0 %v483_v9 }
  0x39   :  { %452 = vmatpush3.bf16.msra.mxu1 %v497_v21 }
  0x3a   :  { %423 = vmatpush3.bf16.msra.mxu0 %v484_v10  ;;  %453 = vmatprep.subr.bf16.mxu1 %v595_v0 }
  0x3b   :  { %424 = vmatprep.subr.bf16.mxu0 %v485_v11 }
  0x3d   :  { %454 = vmatpush3.bf16.msra.mxu1 %v498_v23 }
  0x3e   :  { %425 = vmatpush3.bf16.msra.mxu0 %v486_v12  ;;  %455 = vmatprep.subr.bf16.mxu1 %v595_v0 }
  0x3f   :  { %426 = vmatprep.subr.bf16.mxu0 %v487_v15 }
  0x41   :  { %456 = vmatpush3.bf16.msra.mxu1 %v499_v24 }
  0x42   :  { %427 = vmatpush3.bf16.msra.mxu0 %v488_v17  ;;  %457 = vmatprep.subr.bf16.mxu1 %v595_v0 }
  0x43   :  { %428 = vmatprep.subr.bf16.mxu0 %v489_v18 }
  0x45   :  { %458 = vmatpush3.bf16.msra.mxu1 %v500_v25 }
  0x46   :  { %429 = vmatpush3.bf16.msra.mxu0 %v490_v20  ;;  %459 = vmatprep.subr.bf16.mxu1 %v595_v0 }
  0x49   :  { %243 = vmatmul.mubr.bf16.vlgmr.msra.gmra.mxu0 %v491_v22  ;;  %460 = vmatpush3.bf16.msra.mxu1 %v501_v26 }
 0x109   :  { %v430_v27 = vpop.f32.mrf.mxu0 }
 0x10b   :  { %v431_v28 = vpop.f32.mrf.mxu0 }
 0x10c   :  { %v432_v29 = vadd.f32 %v431_v28, %v430_v27 }
 0x10d   :  { %v433_v31 = vpop.f32.mrf.mxu0 }
 0x10e   :  { %v245_v33 = vadd.f32 %v432_v29, %v386_v30 }
 0x10f   :  { %v434_v32 = vpop.f32.mrf.mxu0 }
 0x110   :  { %v435_v34 = vadd.f32 %v434_v32, %v433_v31  ;;  %v251_v36 = vmax.f32 %v245_v33, 0.0 }
 0x112   :  { %v248_v35 = vadd.f32 %v435_v34, %v386_v30 }
 0x114   :  { %v252_v37 = vmax.f32 %v248_v35, 0.0 }
 0x116   :  { %v253_v38 = vpack.c.bf16 %v252_v37, %v251_v36 }
 0x118   :  { %462 = vmatmul.mubr.bf16.vlgmr.msra.gmra.mxu1 %v253_v38 }
 0x1d8   :  { %v359_v40 = vpop.f32.mrf.mxu1 }
 0x1d9   :  { %v360_v41 = vadd.f32 %v405_v39, %v359_v40 }
 0x1da   :  { %v463_v42 = vpop.f32.mrf.mxu1 }
 0x1db   :  { %366 = vst [vmem:[#allocation8] sm:$0xff] %v360_v41 }
 0x1dc   :  { %v362_v43 = vpop.f32.mrf.mxu1 }
 0x1dd   :  { %v363_v44 = vadd.f32 %v405_v39, %v362_v43 }
 0x1de   :  { %v464_v45 = vpop.f32.mrf.mxu1 }
 0x1df   :  { %367 = vst [vmem:[#allocation8 + $0x8] sm:$0xff] %v363_v44 }
 0x1e0   :  { %573 = shalt.err (!%p570_p5)
}
 0x1e1   :  { %379 = dma.vmem_to_hbm [thread:$0]  %s374_s14, 256, %s657_s5, [#allocation4], %s592_s28, %s592_s28, %s593_s29  }
 0x1e2   :  { %586 = dma.done.wait [#allocation4], 256  }
 0x1e3   :  { %587 = vsyncadd [#allocation4], 4294967040 }
 0x1e4   :  { %383 = vsyncpa [#allocation3], 1 }
 0x1e5   :  { %384 = vsyncpa [#allocation6], 1 }
 0x1e6   :  { %385 = vsyncpa [#allocation4], 1 }

// kernel: tpu_custom_call.1
= control target key start
LH: loop header
LB: loop body
LE: loop exit
PB: predicated region body
PF: predicated region fallthrough
CT: control target
= control target key end

     0   :  { %10 = vsyncpa [#allocation3], 0  ;;  %s652_s0 = inlined_call_operand.hbm [shape: bf16[16,256], index: 0, kind: input, shape index: {}]   ;;  %s653_s1 = inlined_call_operand.hbm [shape: bf16[256,128], index: 1, kind: input, shape index: {}]   ;;  %s654_s2 = inlined_call_operand.vmem [shape: f32[1,128], index: 2, kind: input, shape index: {}]   ;;  %s655_s3 = inlined_call_operand.hbm [shape: bf16[128,128], index: 3, kind: input, shape index: {}]   ;;  %s656_s4 = inlined_call_operand.vmem [shape: f32[1,128], index: 4, kind: input, shape index: {}]   ;;  %s657_s5 = inlined_call_operand.hbm [shape: f32[16,128], index: 5, kind: output, shape index: {}]  }
   0x1   :  { %11 = vsyncpa [#allocation6], 0 }
   0x2   :  { %12 = vsyncpa [#allocation4], 0  ;;  %s588_s18 = smov [#allocation5]  }
   0x3   :  { %s30_s19 = sshll.u32 %s588_s18, 4  ;;  %s31_s19 = int_to_ptr.vmem [resolvable:$true] %s30_s19 }
   0x4   :  { %s510_s20 = scalar_lea.vmem %s31_s19, 2048  ;;  %p515_p1 = scmp.lt.s32.totalorder %s31_s19, %s31_s19 }
   0x5   :  { %p511_p0 = scmp.ne.s32.totalorder %s31_s19, %s510_s20  ;;  %p516_p2 = scmp.lt.s32.totalorder %s510_s20, %s510_s20 }
   0x7   :  { %p517_p3 = por %p516_p2, %p515_p1 }
   0x9   :  { %p518_p4 = pnand %p517_p3, %p511_p0 }
   0xb   :  { %521 = shalt.err (!%p518_p4)
}
   0xc   :  { %s589_s21 = smov 64   ;;  %s590_s22 = smov 4  }
   0xd   :  { %36 = dma.hbm_to_vmem [thread:$0]  %s653_s1, 2048, %s31_s19, [#allocation6], %s589_s21, %s589_s21, %s590_s22  }
   0xe   :  { %s591_s25 = smov [#allocation2]  }
   0xf   :  { %s18_s26 = sshll.u32 %s591_s25, 4  ;;  %s19_s26 = int_to_ptr.vmem [resolvable:$true] %s18_s26 }
  0x10   :  { %s530_s27 = scalar_lea.vmem %s19_s26, 256  ;;  %p535_p6 = scmp.lt.s32.totalorder %s19_s26, %s19_s26 }
  0x11   :  { %p531_p5 = scmp.ne.s32.totalorder %s19_s26, %s530_s27  ;;  %p536_p7 = scmp.lt.s32.totalorder %s530_s27, %s530_s27 }
  0x13   :  { %p537_p8 = por %p536_p7, %p535_p6 }
  0x15   :  { %p538_p9 = pnand %p537_p8, %p531_p5 }
  0x17   :  { %541 = shalt.err (!%p538_p9)
}
  0x18   :  { %s592_s28 = smov 128   ;;  %s593_s29 = smov 8  }
  0x19   :  { %24 = dma.hbm_to_vmem [thread:$0]  %s652_s0, 256, %s19_s26, [#allocation3], %s592_s28, %s592_s28, %s593_s29  }
  0x1a   :  { %s594_s1 = smov [#allocation7]  }
  0x1b   :  { %s44_s7 = sshll.u32 %s594_s1, 4  ;;  %s45_s7 = int_to_ptr.vmem [resolvable:$true] %s44_s7 }
  0x1c   :  { %s550_s8 = scalar_lea.vmem %s45_s7, 1024  ;;  %p555_p11 = scmp.lt.s32.totalorder %s45_s7, %s45_s7 }
  0x1d   :  { %p551_p10 = scmp.ne.s32.totalorder %s45_s7, %s550_s8  ;;  %p556_p12 = scmp.lt.s32.totalorder %s550_s8, %s550_s8 }
  0x1f   :  { %p557_p13 = por %p556_p12, %p555_p11 }
  0x21   :  { %p558_p0 = pnand %p557_p13, %p551_p10 }
  0x23   :  { %561 = shalt.err (!%p558_p0)
}
  0x24   :  { %50 = dma.hbm_to_vmem [thread:$0]  %s655_s3, 1024, %s45_s7, [#allocation6], %s589_s21, %s589_s21, %s590_s22  }
  0x25   :  { %582 = dma.done.wait [#allocation3], 256  }
  0x26   :  { %583 = vsyncadd [#allocation3], 4294967040 }
  0x27   :  { %584 = dma.done.wait [#allocation6], 3072  }
  0x28   :  { %585 = vsyncadd [#allocation6], 4294964224  ;;  %v595_v0 = vmov 0.0   ;;  %v475_v1 = vld [vmem:[#allocation5 + $0x78] sm:$0xff]   ;;  %v477_v3 = vld [vmem:[#allocation5 + $0x70] sm:$0xff]   ;;  %vm596_vm0 = vmmov 0  }
  0x29   :  { %445 = vmatprep.subr.bf16.mxu1 %v595_v0  ;;  %v476_v2 = vld [vmem:[#allocation5 + $0x38] sm:$0xff]   ;;  %414 = vmatprep.subr.bf16.mxu0 %v475_v1  ;;  %v478_v4 = vld [vmem:[#allocation5 + $0x30] sm:$0xff]   ;;  %v479_v5 = vld [vmem:[#allocation5 + $0x68] sm:$0xff]   ;;  %s597_s13 = smov [#allocation8]  }
  0x2a   :  { %415 = vmatpush3.bf16.msra.mxu0 %v476_v2  ;;  %v480_v6 = vld [vmem:[#allocation5 + $0x28] sm:$0xff]   ;;  %v481_v7 = vld [vmem:[#allocation5 + $0x60] sm:$0xff]   ;;  %v483_v9 = vld [vmem:[#allocation5 + $0x58] sm:$0xff]   ;;  %461 = vmatprep.mubr.msk.bf16.mxu1 %vm596_vm0, %v595_v0  ;;  %s373_s14 = sshll.u32 %s597_s13, 4  ;;  %s374_s14 = int_to_ptr.vmem [resolvable:$true] %s373_s14 }
  0x2b   :  { %416 = vmatprep.subr.bf16.mxu0 %v477_v3  ;;  %v482_v8 = vld [vmem:[#allocation5 + $0x20] sm:$0xff]   ;;  %v484_v10 = vld [vmem:[#allocation5 + $0x18] sm:$0xff]   ;;  %v485_v11 = vld [vmem:[#allocation5 + $0x50] sm:$0xff]   ;;  %p567_p2 = scmp.lt.s32.totalorder %s374_s14, %s374_s14 }
  0x2c   :  { %v486_v12 = vld [vmem:[#allocation5 + $0x10] sm:$0xff]   ;;  %v494_v14 = vld [vmem:[#allocation7 + $0x38] sm:$0xff]   ;;  %v487_v15 = vld [vmem:[#allocation5 + $0x48] sm:$0xff]  }
  0x2d   :  { %v493_v13 = vld [vmem:[#allocation2 + $0x4] ss:$8 sps:$4 sm:$0xff]   ;;  %446 = vmatpush3.bf16.msra.mxu1 %v494_v14  ;;  %v488_v17 = vld [vmem:[#allocation5 + $0x8] sm:$0xff]   ;;  %v489_v18 = vld [vmem:[#allocation5 + $0x40] sm:$0xff]  }
  0x2e   :  { %417 = vmatpush3.bf16.msra.mxu0 %v478_v4  ;;  %242 = vmatprep.mubr.bf16.mxu0 %v493_v13  ;;  %v495_v16 = vld [vmem:[#allocation7 + $0x30] sm:$0xff]   ;;  %v496_v19 = vld [vmem:[#allocation7 + $0x28] sm:$0xff]   ;;  %v490_v20 = vld [vmem:[#allocation5] sm:$0xff]  }
  0x2f   :  { %418 = vmatprep.subr.bf16.mxu0 %v479_v5  ;;  %447 = vmatprep.subr.bf16.mxu1 %v595_v0  ;;  %v497_v21 = vld [vmem:[#allocation7 + $0x20] sm:$0xff]   ;;  %v491_v22 = vld [vmem:[#allocation2] ss:$8 sps:$4 sm:$0xff]   ;;  %v500_v25 = vld [vmem:[#allocation7 + $0x8] sm:$0xff]  }
  0x30   :  { %v498_v23 = vld [vmem:[#allocation7 + $0x18] sm:$0xff]   ;;  %v499_v24 = vld [vmem:[#allocation7 + $0x10] sm:$0xff]   ;;  %v501_v26 = vld [vmem:[#allocation7] sm:$0xff]  }
  0x31   :  { %448 = vmatpush3.bf16.msra.mxu1 %v495_v16  ;;  %v386_v30 = vld [vmem:[%s654_s2] ss:$0 sm:$0xff]  ;;  %s562_s2 = scalar_lea.vmem %s374_s14, 256 }
  0x32   :  { %419 = vmatpush3.bf16.msra.mxu0 %v480_v6  ;;  %449 = vmatprep.subr.bf16.mxu1 %v595_v0  ;;  %v405_v39 = vld [vmem:[%s656_s4] ss:$0 sm:$0xff]  ;;  %p563_p1 = scmp.ne.s32.totalorder %s374_s14, %s562_s2  ;;  %p568_p3 = scmp.lt.s32.totalorder %s562_s2, %s562_s2 }
  0x33   :  { %420 = vmatprep.subr.bf16.mxu0 %v481_v7 }
  0x34   :  { %p569_p4 = por %p568_p3, %p567_p2 }
  0x35   :  { %450 = vmatpush3.bf16.msra.mxu1 %v496_v19 }
  0x36   :  { %421 = vmatpush3.bf16.msra.mxu0 %v482_v8  ;;  %451 = vmatprep.subr.bf16.mxu1 %v595_v0  ;;  %p570_p5 = pnand %p569_p4, %p563_p1 }
  0x37   :  { %422 = vmatprep.subr.bf16.mxu0 %v483_v9 }
  0x39   :  { %452 = vmatpush3.bf16.msra.mxu1 %v497_v21 }
  0x3a   :  { %423 = vmatpush3.bf16.msra.mxu0 %v484_v10  ;;  %453 = vmatprep.subr.bf16.mxu1 %v595_v0 }
  0x3b   :  { %424 = vmatprep.subr.bf16.mxu0 %v485_v11 }
  0x3d   :  { %454 = vmatpush3.bf16.msra.mxu1 %v498_v23 }
  0x3e   :  { %425 = vmatpush3.bf16.msra.mxu0 %v486_v12  ;;  %455 = vmatprep.subr.bf16.mxu1 %v595_v0 }
  0x3f   :  { %426 = vmatprep.subr.bf16.mxu0 %v487_v15 }
  0x41   :  { %456 = vmatpush3.bf16.msra.mxu1 %v499_v24 }
  0x42   :  { %427 = vmatpush3.bf16.msra.mxu0 %v488_v17  ;;  %457 = vmatprep.subr.bf16.mxu1 %v595_v0 }
  0x43   :  { %428 = vmatprep.subr.bf16.mxu0 %v489_v18 }
  0x45   :  { %458 = vmatpush3.bf16.msra.mxu1 %v500_v25 }
  0x46   :  { %429 = vmatpush3.bf16.msra.mxu0 %v490_v20  ;;  %459 = vmatprep.subr.bf16.mxu1 %v595_v0 }
  0x49   :  { %243 = vmatmul.mubr.bf16.vlgmr.msra.gmra.mxu0 %v491_v22  ;;  %460 = vmatpush3.bf16.msra.mxu1 %v501_v26 }
 0x109   :  { %v430_v27 = vpop.f32.mrf.mxu0 }
 0x10b   :  { %v431_v28 = vpop.f32.mrf.mxu0 }
 0x10c   :  { %v432_v29 = vadd.f32 %v431_v28, %v430_v27 }
 0x10d   :  { %v433_v31 = vpop.f32.mrf.mxu0 }
 0x10e   :  { %v245_v33 = vadd.f32 %v432_v29, %v386_v30 }
 0x10f   :  { %v434_v32 = vpop.f32.mrf.mxu0 }
 0x110   :  { %v435_v34 = vadd.f32 %v434_v32, %v433_v31  ;;  %v251_v36 = vmax.f32 %v245_v33, 0.0 }
 0x112   :  { %v248_v35 = vadd.f32 %v435_v34, %v386_v30 }
 0x114   :  { %v252_v37 = vmax.f32 %v248_v35, 0.0 }
 0x116   :  { %v253_v38 = vpack.c.bf16 %v252_v37, %v251_v36 }
 0x118   :  { %462 = vmatmul.mubr.bf16.vlgmr.msra.gmra.mxu1 %v253_v38 }
 0x1d8   :  { %v359_v40 = vpop.f32.mrf.mxu1 }
 0x1d9   :  { %v360_v41 = vadd.f32 %v405_v39, %v359_v40 }
 0x1da   :  { %v463_v42 = vpop.f32.mrf.mxu1 }
 0x1db   :  { %366 = vst [vmem:[#allocation8] sm:$0xff] %v360_v41 }
 0x1dc   :  { %v362_v43 = vpop.f32.mrf.mxu1 }
 0x1dd   :  { %v363_v44 = vadd.f32 %v405_v39, %v362_v43 }
 0x1de   :  { %v464_v45 = vpop.f32.mrf.mxu1 }
 0x1df   :  { %367 = vst [vmem:[#allocation8 + $0x8] sm:$0xff] %v363_v44 }
 0x1e0   :  { %573 = shalt.err (!%p570_p5)
}
 0x1e1   :  { %379 = dma.vmem_to_hbm [thread:$0]  %s374_s14, 256, %s657_s5, [#allocation4], %s592_s28, %s592_s28, %s593_s29  }
 0x1e2   :  { %586 = dma.done.wait [#allocation4], 256  }
 0x1e3   :  { %587 = vsyncadd [#allocation4], 4294967040 }
 0x1e4   :  { %383 = vsyncpa [#allocation3], 1 }
 0x1e5   :  { %384 = vsyncpa [#allocation6], 1 }
 0x1e6   :  { %385 = vsyncpa [#allocation4], 1 }

</bundles_post_ra>
